<compile_context>
chip_gen: v7x
topology: tpu7x:2x2x1
jax: 0.10.0
libtpu: 0.0.40
codegen_flags: <defaults>
</compile_context>

<pallas_src>
import functools
import math

import jax
import jax.numpy as jnp
from jax.experimental import pallas as pl
from jax.experimental.pallas import tpu as pltpu


N_PAD = 128   # lane-dense padded width of the fc3 logits / softmax
TB_MAX = 256  # batch-tile rows (multiple of 8; small enough for v7x 64 MiB VMEM)


# -----------------------------------------------------------------------------
# Fused Pallas kernel: fc1 -> relu -> fc2 -> relu -> fc3 -> softmax(dim=1)
# -----------------------------------------------------------------------------

def _actor_head_kernel(x_ref, w1_ref, b1_ref, w2_ref, b2_ref, w3_ref, b3_ref,
                       o_ref, *, n_out):
    # fc1 (bf16 x bf16 -> f32 acc) + bias + ReLU
    h1 = jnp.maximum(
        jnp.dot(x_ref[...], w1_ref[...], preferred_element_type=jnp.float32)
        + b1_ref[...], 0.0)
    # Dropout(p=0.4): identity at inference (see TODO above).
    h2 = jnp.maximum(
        jnp.dot(h1.astype(jnp.bfloat16), w2_ref[...],
                preferred_element_type=jnp.float32)
        + b2_ref[...], 0.0)
    logits = (jnp.dot(h2.astype(jnp.bfloat16), w3_ref[...],
                      preferred_element_type=jnp.float32)
              + b3_ref[...])
    # torch nn.Softmax() on a 2-D tensor -> dim=1 (last dim). Padded logits
    # carry bias -1e30 so exp(pad - max) underflows to exactly 0.
    m = jnp.max(logits, axis=-1, keepdims=True)
    e = jnp.exp(logits - m)
    denom = jnp.sum(e, axis=-1, keepdims=True)
    probs = e / denom                      # exact normalization (rows sum to 1)
    o_ref[...] = probs[:, :n_out]          # store only the real columns


# -----------------------------------------------------------------------------
# JIT'ed wrapper
# -----------------------------------------------------------------------------

@functools.partial(jax.jit, static_argnames=("output_dim",))
def discrete_actor_head(params, x, *, output_dim):
    """x: (B, input_dim) -> (B, output_dim) softmax probabilities (float32)."""
    B, D = x.shape
    H = params["fc1_w"].shape[1]
    NP = params["fc3_w_pad"].shape[1]

    x = x.astype(jnp.bfloat16)

    # Batch tiling: weights stay VMEM-resident across the grid; x/out tiles
    # are double-buffered.  Small B -> single full-batch block.
    if B <= TB_MAX:
        tb, b_pad = B, B
    else:
        tb = TB_MAX
        b_pad = math.ceil(B / tb) * tb
        if b_pad != B:
            x = jnp.pad(x, ((0, b_pad - B), (0, 0)))
    grid = (b_pad // tb,)

    kernel = functools.partial(_actor_head_kernel, n_out=output_dim)
    out = pl.pallas_call(
        kernel,
        out_shape=jax.ShapeDtypeStruct((b_pad, output_dim), jnp.float32),
        grid=grid,
        in_specs=[
            pl.BlockSpec((tb, D), lambda i: (i, 0)),    # x tile
            pl.BlockSpec((D, H), lambda i: (0, 0)),     # fc1 weight (resident)
            pl.BlockSpec((1, H), lambda i: (0, 0)),     # fc1 bias
            pl.BlockSpec((H, H), lambda i: (0, 0)),     # fc2 weight
            pl.BlockSpec((1, H), lambda i: (0, 0)),     # fc2 bias
            pl.BlockSpec((H, NP), lambda i: (0, 0)),    # fc3 weight (padded)
            pl.BlockSpec((1, NP), lambda i: (0, 0)),    # fc3 bias (padded)
        ],
        out_specs=pl.BlockSpec((tb, output_dim), lambda i: (i, 0)),
        compiler_params=pltpu.CompilerParams(
            dimension_semantics=("parallel",),          # 2nd TC on v7x
            vmem_limit_bytes=32 << 20,                  # safe on v7x 64 MiB
        ),
    )(x,
      params["fc1_w"], params["fc1_b"],
      params["fc2_w"], params["fc2_b"],
      params["fc3_w_pad"], params["fc3_b_pad"])

    if b_pad != B:
        out = out[:B]
    return out


# -----------------------------------------------------------------------------
# Parameter init (mirrors torch nn.Linear defaults: U(-1/sqrt(fan_in), +..))
# Weights stored in bf16 (MXU-native), biases in f32 pre-shaped as (1, N).
# -----------------------------------------------------------------------------

def init_params(key, input_dim, output_dim, hidden_dim, n_pad=N_PAD):
    assert n_pad >= output_dim and n_pad % 128 == 0
    ks = jax.random.split(key, 6)

    def lin(kw, kb, fan_in, fan_out):
        bound = 1.0 / (fan_in ** 0.5)
        w = jax.random.uniform(kw, (fan_in, fan_out), jnp.float32, -bound, bound)
        b = jax.random.uniform(kb, (fan_out,), jnp.float32, -bound, bound)
        return w, b

    w1, b1 = lin(ks[0], ks[1], input_dim, hidden_dim)
    w2, b2 = lin(ks[2], ks[3], hidden_dim, hidden_dim)
    w3, b3 = lin(ks[4], ks[5], hidden_dim, output_dim)

    p = {}
    p["fc1_w"] = w1.astype(jnp.bfloat16)
    p["fc1_b"] = b1.reshape(1, hidden_dim)
    p["fc2_w"] = w2.astype(jnp.bfloat16)
    p["fc2_b"] = b2.reshape(1, hidden_dim)
    # Pad fc3 to a lane-dense 128-wide output; padded logits get -1e30 bias
    # (finite, so no inf-inf; exp underflows to exactly 0).
    p["fc3_w_pad"] = jnp.concatenate(
        [w3, jnp.zeros((hidden_dim, n_pad - output_dim), jnp.float32)],
        axis=1).astype(jnp.bfloat16)
    p["fc3_b_pad"] = jnp.concatenate(
        [b3, jnp.full((n_pad - output_dim,), -1e30, jnp.float32)],
        axis=0).reshape(1, n_pad)
    return p


# -----------------------------------------------------------------------------
# Demo / correctness check
# -----------------------------------------------------------------------------

def ref_forward(p, xx, n_out):
    """Pure-JAX reference with the same numerics (bf16 MXU inputs, f32 math)."""
    xb = xx.astype(jnp.bfloat16)
    h1 = jnp.maximum(
        jnp.dot(xb, p["fc1_w"], preferred_element_type=jnp.float32)
        + p["fc1_b"], 0.0)
    h2 = jnp.maximum(
        jnp.dot(h1.astype(jnp.bfloat16), p["fc2_w"],
                preferred_element_type=jnp.float32) + p["fc2_b"], 0.0)
    logits = (jnp.dot(h2.astype(jnp.bfloat16), p["fc3_w_pad"],
                      preferred_element_type=jnp.float32) + p["fc3_b_pad"])
    return jax.nn.softmax(logits, axis=-1)[:, :n_out]


if __name__ == "__main__":
    key = jax.random.PRNGKey(0)
    pkey, xkey = jax.random.split(key)

    B, input_dim, hidden_dim, output_dim = 2, 32, 32, 3
    params = init_params(pkey, input_dim, output_dim, hidden_dim)
    x = jax.random.normal(xkey, (B, input_dim), dtype=jnp.float32)

    out = discrete_actor_head(params, x, output_dim=output_dim)
    out = jax.block_until_ready(out)

    ref = jax.block_until_ready(ref_forward(params, x, output_dim))

    assert out.shape == (B, output_dim)
    assert bool(jnp.all(jnp.isfinite(out)))
    assert bool(jnp.all((out >= 0.0) & (out <= 1.0)))
    assert bool(jnp.allclose(out.sum(axis=1), 1.0, atol=1e-3))
    assert bool(jnp.allclose(out, ref, rtol=1e-2, atol=1e-4))
    print("KERNEL_OK")
</pallas_src>

<mosaic_0001>
module attributes {stable_mosaic.version = 11 : i64} {
  func.func @_actor_head_kernel(%arg0: i32, %arg1: memref<2x32xbf16, #tpu.memory_space<vmem>>, %arg2: memref<32x32xbf16, #tpu.memory_space<vmem>>, %arg3: memref<1x32xf32, #tpu.memory_space<vmem>>, %arg4: memref<32x32xbf16, #tpu.memory_space<vmem>>, %arg5: memref<1x32xf32, #tpu.memory_space<vmem>>, %arg6: memref<32x128xbf16, #tpu.memory_space<vmem>>, %arg7: memref<1x128xf32, #tpu.memory_space<vmem>>, %arg8: memref<2x3xf32, #tpu.memory_space<vmem>>) attributes {dimension_semantics = [#tpu.dimension_semantics<parallel>], iteration_bounds = array<i64: 1>, scalar_prefetch = 0 : i64, scratch_operands = 0 : i64, tpu.core_type = #tpu.core_type<tc>, window_params = [{transform_indices = @transform_0, window_bounds = array<i64: 2, 32>}, {pipeline_mode = #tpu.pipeline_mode<synchronous>, transform_indices = @transform_1, window_bounds = array<i64: 32, 32>}, {pipeline_mode = #tpu.pipeline_mode<synchronous>, transform_indices = @transform_2, window_bounds = array<i64: 1, 32>}, {pipeline_mode = #tpu.pipeline_mode<synchronous>, transform_indices = @transform_3, window_bounds = array<i64: 32, 32>}, {pipeline_mode = #tpu.pipeline_mode<synchronous>, transform_indices = @transform_4, window_bounds = array<i64: 1, 32>}, {pipeline_mode = #tpu.pipeline_mode<synchronous>, transform_indices = @transform_5, window_bounds = array<i64: 32, 128>}, {pipeline_mode = #tpu.pipeline_mode<synchronous>, transform_indices = @transform_6, window_bounds = array<i64: 1, 128>}, {transform_indices = @transform_7, window_bounds = array<i64: 2, 3>}]} {
    %c0 = arith.constant 0 : index
    %c0_0 = arith.constant 0 : index
    %0 = vector.load %arg1[%c0, %c0_0] : memref<2x32xbf16, #tpu.memory_space<vmem>>, vector<2x32xbf16>
    %c0_1 = arith.constant 0 : index
    %c0_2 = arith.constant 0 : index
    %1 = vector.load %arg2[%c0_1, %c0_2] : memref<32x32xbf16, #tpu.memory_space<vmem>>, vector<32x32xbf16>
    %cst = arith.constant dense<0.000000e+00> : vector<2x32xf32>
    %2 = tpu.matmul %0, %1, %cst {dimension_numbers = #tpu.dot_dimension_numbers<[1], [0], [0], [1], [0, 0, 1, 1], [], []>} : vector<2x32xbf16>, vector<32x32xbf16>, vector<2x32xf32> -> vector<2x32xf32>
    %c0_3 = arith.constant 0 : index
    %c0_4 = arith.constant 0 : index
    %3 = vector.load %arg3[%c0_3, %c0_4] : memref<1x32xf32, #tpu.memory_space<vmem>>, vector<1x32xf32>
    %4 = vector.broadcast %3 : vector<1x32xf32> to vector<2x32xf32>
    %5 = arith.addf %2, %4 : vector<2x32xf32>
    %cst_5 = arith.constant 0.000000e+00 : f32
    %6 = vector.broadcast %cst_5 : f32 to vector<2x32xf32>
    %7 = arith.maximumf %5, %6 : vector<2x32xf32>
    %8 = arith.truncf %7 : vector<2x32xf32> to vector<2x32xbf16>
    %c0_6 = arith.constant 0 : index
    %c0_7 = arith.constant 0 : index
    %9 = vector.load %arg4[%c0_6, %c0_7] : memref<32x32xbf16, #tpu.memory_space<vmem>>, vector<32x32xbf16>
    %cst_8 = arith.constant dense<0.000000e+00> : vector<2x32xf32>
    %10 = tpu.matmul %8, %9, %cst_8 {dimension_numbers = #tpu.dot_dimension_numbers<[1], [0], [0], [1], [0, 0, 1, 1], [], []>} : vector<2x32xbf16>, vector<32x32xbf16>, vector<2x32xf32> -> vector<2x32xf32>
    %c0_9 = arith.constant 0 : index
    %c0_10 = arith.constant 0 : index
    %11 = vector.load %arg5[%c0_9, %c0_10] : memref<1x32xf32, #tpu.memory_space<vmem>>, vector<1x32xf32>
    %12 = vector.broadcast %11 : vector<1x32xf32> to vector<2x32xf32>
    %13 = arith.addf %10, %12 : vector<2x32xf32>
    %cst_11 = arith.constant 0.000000e+00 : f32
    %14 = vector.broadcast %cst_11 : f32 to vector<2x32xf32>
    %15 = arith.maximumf %13, %14 : vector<2x32xf32>
    %16 = arith.truncf %15 : vector<2x32xf32> to vector<2x32xbf16>
    %c0_12 = arith.constant 0 : index
    %c0_13 = arith.constant 0 : index
    %17 = vector.load %arg6[%c0_12, %c0_13] : memref<32x128xbf16, #tpu.memory_space<vmem>>, vector<32x128xbf16>
    %cst_14 = arith.constant dense<0.000000e+00> : vector<2x128xf32>
    %18 = tpu.matmul %16, %17, %cst_14 {dimension_numbers = #tpu.dot_dimension_numbers<[1], [0], [0], [1], [0, 0, 1, 1], [], []>} : vector<2x32xbf16>, vector<32x128xbf16>, vector<2x128xf32> -> vector<2x128xf32>
    %c0_15 = arith.constant 0 : index
    %c0_16 = arith.constant 0 : index
    %19 = vector.load %arg7[%c0_15, %c0_16] : memref<1x128xf32, #tpu.memory_space<vmem>>, vector<1x128xf32>
    %20 = vector.broadcast %19 : vector<1x128xf32> to vector<2x128xf32>
    %21 = arith.addf %18, %20 : vector<2x128xf32>
    %cst_17 = arith.constant dense<0xFF800000> : vector<2xf32>
    %22 = vector.multi_reduction <maximumf>, %21, %cst_17 [1] : vector<2x128xf32> to vector<2xf32>
    %23 = vector.shape_cast %22 : vector<2xf32> to vector<2x1xf32>
    %24 = vector.broadcast %23 : vector<2x1xf32> to vector<2x128xf32>
    %25 = arith.subf %21, %24 : vector<2x128xf32>
    %26 = math.exp %25 : vector<2x128xf32>
    %cst_18 = arith.constant dense<0.000000e+00> : vector<2xf32>
    %27 = vector.multi_reduction <add>, %26, %cst_18 [1] : vector<2x128xf32> to vector<2xf32>
    %28 = vector.shape_cast %27 : vector<2xf32> to vector<2x1xf32>
    %29 = vector.broadcast %28 : vector<2x1xf32> to vector<2x128xf32>
    %30 = arith.divf %26, %29 : vector<2x128xf32>
    %31 = vector.extract_strided_slice %30 {offsets = [0, 0], sizes = [2, 3], strides = [1, 1]} : vector<2x128xf32> to vector<2x3xf32>
    %c0_19 = arith.constant 0 : index
    %c0_20 = arith.constant 0 : index
    %32 = vector.load %arg8[%c0_19, %c0_20] : memref<2x3xf32, #tpu.memory_space<vmem>>, vector<2x3xf32>
    tpu.vector_store %arg8[%c0_19, %c0_20], %31 {strides = array<i32>} : memref<2x3xf32, #tpu.memory_space<vmem>>, vector<2x3xf32>,
    return
  }
  func.func @transform_0(%arg0: i32) -> (i32, i32) {
    %c0_i32 = arith.constant 0 : i32
    %c0_i32_0 = arith.constant 0 : i32
    return %arg0, %c0_i32 : i32, i32
  }
  func.func @transform_1(%arg0: i32) -> (i32, i32) {
    %c0_i32 = arith.constant 0 : i32
    %c0_i32_0 = arith.constant 0 : i32
    %c0_i32_1 = arith.constant 0 : i32
    return %c0_i32, %c0_i32_0 : i32, i32
  }
  func.func @transform_2(%arg0: i32) -> (i32, i32) {
    %c0_i32 = arith.constant 0 : i32
    %c0_i32_0 = arith.constant 0 : i32
    %c0_i32_1 = arith.constant 0 : i32
    return %c0_i32, %c0_i32_0 : i32, i32
  }
  func.func @transform_3(%arg0: i32) -> (i32, i32) {
    %c0_i32 = arith.constant 0 : i32
    %c0_i32_0 = arith.constant 0 : i32
    %c0_i32_1 = arith.constant 0 : i32
    return %c0_i32, %c0_i32_0 : i32, i32
  }
  func.func @transform_4(%arg0: i32) -> (i32, i32) {
    %c0_i32 = arith.constant 0 : i32
    %c0_i32_0 = arith.constant 0 : i32
    %c0_i32_1 = arith.constant 0 : i32
    return %c0_i32, %c0_i32_0 : i32, i32
  }
  func.func @transform_5(%arg0: i32) -> (i32, i32) {
    %c0_i32 = arith.constant 0 : i32
    %c0_i32_0 = arith.constant 0 : i32
    %c0_i32_1 = arith.constant 0 : i32
    return %c0_i32, %c0_i32_0 : i32, i32
  }
  func.func @transform_6(%arg0: i32) -> (i32, i32) {
    %c0_i32 = arith.constant 0 : i32
    %c0_i32_0 = arith.constant 0 : i32
    %c0_i32_1 = arith.constant 0 : i32
    return %c0_i32, %c0_i32_0 : i32, i32
  }
  func.func @transform_7(%arg0: i32) -> (i32, i32) {
    %c0_i32 = arith.constant 0 : i32
    %c0_i32_0 = arith.constant 0 : i32
    return %arg0, %c0_i32 : i32, i32
  }
}

</mosaic_0001>

<bundles_post_ra>
// kernel: discrete_actor_head.1
= control target key start
LH: loop header
LB: loop body
LE: loop exit
PB: predicated region body
PF: predicated region fallthrough
CT: control target
= control target key end

     0   :  { %12 = vsyncpa [#allocation3], 0  ;;  %s528_s0 = inlined_call_operand.vmem [shape: bf16[2,32], index: 0, kind: input, shape index: {}]   ;;  %s529_s1 = inlined_call_operand.hbm [shape: bf16[32,32], index: 1, kind: input, shape index: {}]   ;;  %s530_s2 = inlined_call_operand.vmem [shape: f32[1,32], index: 2, kind: input, shape index: {}]   ;;  %s531_s3 = inlined_call_operand.hbm [shape: bf16[32,32], index: 3, kind: input, shape index: {}]   ;;  %s532_s4 = inlined_call_operand.vmem [shape: f32[1,32], index: 4, kind: input, shape index: {}]   ;;  %s533_s5 = inlined_call_operand.vmem [shape: bf16[32,128], index: 5, kind: input, shape index: {}]   ;;  %s534_s6 = inlined_call_operand.vmem [shape: f32[1,128], index: 6, kind: input, shape index: {}]   ;;  %s535_s7 = inlined_call_operand.hbm [shape: f32[2,3], index: 7, kind: output, shape index: {}]  }
   0x1   :  { %13 = vsyncpa [#allocation6], 0 }
   0x2   :  { %14 = vsyncpa [#allocation4], 0  ;;  %s424_s24 = smov [#allocation2]   ;;  %s352_s28 = scalar_lea.hbm %s529_s1, 256 }
   0x3   :  { %s22_s25 = sshll.u32 %s424_s24, 4  ;;  %p353_p0 = scmp.ne.s32.totalorder %s529_s1, %s352_s28  ;;  %s23_s25 = int_to_ptr.vmem [resolvable:$true] %s22_s25 }
   0x4   :  { %p356_p1 = scmp.lt.u32.totalorder %s352_s28, %s529_s1 }
   0x6   :  { %p358_p2 = pnand %p356_p1, %p353_p0 }
   0x8   :  { %361 = shalt.err (!%p358_p2)
}
   0x9   :  { %s362_s10 = scalar_lea.vmem %s23_s25, 256  ;;  %p367_p4 = scmp.lt.s32.totalorder %s23_s25, %s23_s25 }
   0xa   :  { %p363_p3 = scmp.ne.s32.totalorder %s23_s25, %s362_s10  ;;  %p368_p5 = scmp.lt.s32.totalorder %s362_s10, %s362_s10 }
   0xc   :  { %p369_p6 = por %p368_p5, %p367_p4 }
   0xe   :  { %p370_p7 = pnand %p369_p6, %p363_p3 }
  0x10   :  { %373 = shalt.err (!%p370_p7)
}
  0x11   :  { %s425_s11 = smov 64   ;;  %s426_s12 = smov 4  }
  0x12   :  { %28 = dma.hbm_to_vmem [thread:$0]  %s529_s1, 256, %s23_s25, [#allocation3], %s425_s11, %s425_s11, %s426_s12  }
  0x13   :  { %s427_s15 = smov [#allocation5]   ;;  %s374_s19 = scalar_lea.hbm %s531_s3, 256 }
  0x14   :  { %s36_s16 = sshll.u32 %s427_s15, 4  ;;  %p375_p8 = scmp.ne.s32.totalorder %s531_s3, %s374_s19  ;;  %s37_s16 = int_to_ptr.vmem [resolvable:$true] %s36_s16 }
  0x15   :  { %p378_p9 = scmp.lt.u32.totalorder %s374_s19, %s531_s3 }
  0x17   :  { %p380_p10 = pnand %p378_p9, %p375_p8 }
  0x19   :  { %383 = shalt.err (!%p380_p10)
}
  0x1a   :  { %s384_s24 = scalar_lea.vmem %s37_s16, 256  ;;  %p389_p12 = scmp.lt.s32.totalorder %s37_s16, %s37_s16 }
  0x1b   :  { %p385_p11 = scmp.ne.s32.totalorder %s37_s16, %s384_s24  ;;  %p390_p13 = scmp.lt.s32.totalorder %s384_s24, %s384_s24 }
  0x1d   :  { %p391_p0 = por %p390_p13, %p389_p12 }
  0x1f   :  { %p392_p1 = pnand %p391_p0, %p385_p11 }
  0x21   :  { %395 = shalt.err (!%p392_p1)
}
  0x22   :  { %42 = dma.hbm_to_vmem [thread:$0]  %s531_s3, 256, %s37_s16, [#allocation6], %s425_s11, %s425_s11, %s426_s12  }
  0x23   :  { %418 = dma.done.wait [#allocation3], 256  }
  0x24   :  { %419 = vsyncadd [#allocation3], 4294967040 }
  0x25   :  { %420 = dma.done.wait [#allocation6], 256  }
  0x26   :  { %421 = vsyncadd [#allocation6], 4294967040  ;;  %v428_v0 = vmov 0.0   ;;  %vm429_vm0 = vmmov 0   ;;  %v342_v1 = vld [vmem:[#allocation2] sm:$0xff]   ;;  %v343_v2 = vld [vmem:[#allocation2 + $0x8] sm:$0xff]  }
  0x27   :  { %311 = vmatprep.subr.bf16.mxu0 %v428_v0  ;;  %315 = vmatprep.mubr.msk.bf16.mxu0 %vm429_vm0, %v428_v0  ;;  %v56_v3 = vld [vmem:[%s528_s0] sm:$0x1]  ;;  %vm80_vm1 = vcmask 261120   ;;  %v344_v4 = vld [vmem:[#allocation5] sm:$0xff]   ;;  %v345_v5 = vld [vmem:[#allocation5 + $0x8] sm:$0xff]   ;;  %vm260_vm2 = vcmask 1041408  }
  0x28   :  { %319 = vmatprep.subr.bf16.mxu1 %v428_v0  ;;  %323 = vmatprep.mubr.msk.bf16.mxu1 %vm429_vm0, %v428_v0  ;;  %v346_v6 = vld [vmem:[%s533_s5] sm:$0xff]   ;;  %v347_v15 = vld [vmem:[%s533_s5 + $0x8] sm:$0xff]   ;;  %vm272_vm3 = vcmask 17408  }
  0x29   :  { %312 = vmatpush3.bf16.msra.mxu0 %v342_v1  ;;  %320 = vmatpush3.bf16.msra.mxu1 %v344_v4  ;;  %v290_v7 = vld [vmem:[%s530_s2] ss:$0 sm:$0xff] }
  0x2a   :  { %313 = vmatprep.subr.bf16.mxu0 %v428_v0  ;;  %321 = vmatprep.subr.bf16.mxu1 %v428_v0  ;;  %v294_v16 = vld [vmem:[%s532_s4] ss:$0 sm:$0xff]  ;;  %s430_s4 = smov [#allocation7]  }
  0x2b   :  { %v298_v24 = vld [vmem:[%s534_s6] ss:$0 sm:$0xff]  ;;  %s280_s5 = sshll.u32 %s430_s4, 4  ;;  %s281_s5 = int_to_ptr.vmem [resolvable:$true] %s280_s5 }
  0x2c   :  { %s396_s6 = scalar_lea.vmem %s281_s5, 32  ;;  %p401_p3 = scmp.lt.s32.totalorder %s281_s5, %s281_s5 }
  0x2d   :  { %314 = vmatpush3.bf16.msra.mxu0 %v343_v2  ;;  %322 = vmatpush3.bf16.msra.mxu1 %v345_v5  ;;  %p397_p2 = scmp.ne.s32.totalorder %s281_s5, %s396_s6  ;;  %p402_p4 = scmp.lt.s32.totalorder %s396_s6, %s396_s6 }
  0x2e   :  { %327 = vmatprep.subr.bf16.mxu0 %v428_v0 }
  0x2f   :  { %p403_p5 = por %p402_p4, %p401_p3 }
  0x30   :  { %316 = vmatmul.mubr.msk.bf16.vlgmr.msra.gmra.mrb[0].mxu0 %vm80_vm1, %v56_v3 }
  0x31   :  { %331 = vmatprep.mubr.msk.bf16.mxu0 %vm429_vm0, %v428_v0  ;;  %328 = vmatpush3.bf16.msra.mxu0 %v346_v6  ;;  %p404_p6 = pnand %p403_p5, %p397_p2 }
  0x32   :  { %329 = vmatprep.subr.bf16.mxu0 %v428_v0 }
  0x35   :  { %330 = vmatpush3.bf16.msra.mxu0 %v347_v15 }
 0x103   :  { %v118_v8 = vpop.f32.mrb[0].mxu0 }
 0x104   :  { %v119_v9 = vadd.f32 %v290_v7, %v118_v8  ;;  %v317_v10 = vpop.f32.mrb[1].mxu0 }
 0x105   :  { %v121_v11 = vpop.f32.mrb[2].mxu0 }
 0x106   :  { %v124_v12 = vmax.f32 %v119_v9, 0.0  ;;  %v318_v13 = vpop.f32.mrb[3].mxu0 }
 0x108   :  { %v125_v14 = vpack.c.bf16 %v124_v12, %v124_v12 }
 0x10a   :  { %324 = vmatmul.mubr.msk.bf16.vlgmr.msra.gmra.mrb[0].mxu1 %vm80_vm1, %v125_v14 }
 0x1dd   :  { %v186_v17 = vpop.f32.mrb[0].mxu1 }
 0x1de   :  { %v187_v18 = vadd.f32 %v294_v16, %v186_v17  ;;  %v325_v19 = vpop.f32.mrb[1].mxu1 }
 0x1df   :  { %v189_v20 = vpop.f32.mrb[2].mxu1 }
 0x1e0   :  { %v192_v21 = vmax.f32 %v187_v18, 0.0  ;;  %v326_v22 = vpop.f32.mrb[3].mxu1 }
 0x1e2   :  { %v193_v23 = vpack.c.bf16 %v192_v21, %v192_v21 }
 0x1e4   :  { %332 = vmatmul.mubr.msk.bf16.vlgmr.msra.gmra.mrb[4].mxu0 %vm80_vm1, %v193_v23 }
 0x2b7   :  { %v254_v25 = vpop.f32.mrb[4].mxu0 }
 0x2b8   :  { %v255_v26 = vadd.f32 %v298_v24, %v254_v25  ;;  %v333_v27 = vpop.f32.mrb[5].mxu0 }
 0x2b9   :  { %v257_v28 = vpop.f32.mrb[6].mxu0 }
 0x2ba   :  { %v334_v29 = vpop.f32.mrb[7].mxu0  ;;  %v261_v30 = vsel %vm260_vm2, %v255_v26, -inf }
 0x2bb   :  { %262 = vmax.xlane.f32.xlu0 %v261_v30 }
 0x348   :  { %v263_v31 = vpop.xlane.xlu0 %262 }
 0x349   :  { %v264_v32 = vsub.f32 %v255_v26, %v263_v31 }
 0x34b   :  { %v265_v33 = vmul.f32 1.442695, %v264_v32 }
 0x34d   :  { %348 = vpow2.f32 %v265_v33 }
 0x357   :  { %v349_v34 = vpop.eup %348 }
 0x358   :  { %v267_v35 = vsel %vm260_vm2, %v349_v34, 0.0 }
 0x359   :  { %268 = vadd.xlane.f32.xlu0 %v267_v35 }
 0x3e6   :  { %v269_v36 = vpop.xlane.xlu0 %268 }
 0x3e7   :  { %350 = vrcp.f32 %v269_v36 }
 0x3f1   :  { %v351_v37 = vpop.eup %350 }
 0x3f2   :  { %v271_v38 = vmul.f32 %v351_v37, %v349_v34 }
 0x3f4   :  { %273 = vst.msk [vmem:[#allocation7] sm:$0x3] %vm272_vm3, %v271_v38 }
 0x3f5   :  { %407 = shalt.err (!%p404_p6)
}
 0x3f6   :  { %s408_s14 = scalar_lea.hbm %s535_s7, 32 }
 0x3f7   :  { %p409_p7 = scmp.ne.s32.totalorder %s535_s7, %s408_s14  ;;  %p412_p8 = scmp.lt.u32.totalorder %s408_s14, %s535_s7 }
 0x3f9   :  { %p414_p9 = pnand %p412_p8, %p409_p7 }
 0x3fb   :  { %417 = shalt.err (!%p414_p9)
}
 0x3fc   :  { %283 = dma.vmem_to_hbm [thread:$0]  %s281_s5, 32, %s535_s7, [#allocation4]  }
 0x3fd   :  { %422 = dma.done.wait [#allocation4], 32  }
 0x3fe   :  { %423 = vsyncadd [#allocation4], 4294967264 }
 0x3ff   :  { %287 = vsyncpa [#allocation3], 1 }
 0x400   :  { %288 = vsyncpa [#allocation6], 1 }
 0x401   :  { %289 = vsyncpa [#allocation4], 1 }

</bundles_post_ra>
